<compile_context>
chip_gen: v7x
topology: tpu7x:2x2x1
jax: 0.10.0
libtpu: 0.0.40
codegen_flags: <defaults>
</compile_context>

<pallas_src>
import jax
import jax.numpy as jnp
from jax.experimental import pallas as pl
from jax.experimental.pallas import tpu as pltpu


def qtran_qbase_kernel(h_ref, a_ref, st_ref,
                       w1h_ref, w1a_ref, b1_ref, w2_ref, b2_ref,
                       wq1s_ref, wq1e_ref, bq1_ref,
                       wq2_ref, bq2_ref,
                       wq3_ref, bq3_ref,
                       q_ref):
    mdt = w1h_ref.dtype  # matmul operand dtype (bf16 or f32); accumulate in f32

    def mm(x, w_ref):
        return jnp.dot(x.astype(mdt), w_ref[...],
                       preferred_element_type=jnp.float32)

    h = h_ref[...]          # (tb, A*H)   f32, agents packed along lanes
    a = a_ref[...]          # (tb, A*NA)  f32
    st = st_ref[...]        # (tb, S)     f32

    # per-agent encoder MLP on all agents at once (block-diagonal weights);
    # the hidden/action concat is folded into the split W1_h / W1_a weights.
    e1 = jnp.maximum(mm(h, w1h_ref) + mm(a, w1a_ref) + b1_ref[...], 0.0)
    e = mm(e1, w2_ref) + b2_ref[...]                    # (tb, P) f32

    # Q head: agent-sum + input concat folded into split / tiled weights
    h1 = jnp.maximum(mm(st, wq1s_ref) + mm(e, wq1e_ref) + bq1_ref[...], 0.0)
    h2 = jnp.maximum(mm(h1, wq2_ref) + bq2_ref[...], 0.0)

    # final layer as a transposed dot -> lane-dense (1, tb) row output
    q_row = jax.lax.dot_general(
        wq3_ref[...], h2.astype(mdt),                   # (1,Qh) x (tb,Qh)^T
        dimension_numbers=(((1,), (1,)), ((), ())),
        preferred_element_type=jnp.float32)             # (1, tb)
    q_ref[...] = (q_row + bq3_ref[...])[None]           # (1, 1, tb)


def qtran_qbase_forward(state, hidden_states, actions, params, *,
                        tb=512, matmul_dtype=jnp.bfloat16):
    """state: (E, T, S), hidden_states: (E, T, A, H), actions: (E, T, A, NA).
    Returns q of shape (E*T, 1), matching the PyTorch module output."""
    E, T, A, NA = actions.shape
    H = hidden_states.shape[-1]
    S = state.shape[-1]
    HA = H + NA
    B = E * T
    AH, ANA, AHA = A * H, A * NA, A * HA

    assert tb % 8 == 0, "row tile must be sublane-aligned (multiple of 8)"
    # cap tb so the grid has >= 2 steps whenever possible (both v7x TCs busy)
    half = max(8, (((B + 1) // 2) + 7) // 8 * 8)
    tb_eff = max(8, min(tb, half))
    G = pl.cdiv(B, tb_eff)

    (w1, b1, w2, b2, wq1, bq1, wq2, bq2, wq3, bq3) = params

    # --- fold per-agent structure into the weights (once, outside the kernel) ---
    eye_a = jnp.eye(A, dtype=jnp.float32)
    w1h_bd = jnp.kron(eye_a, w1[:H])          # (A*H,  A*HA) block-diag, hidden rows
    w1a_bd = jnp.kron(eye_a, w1[H:])          # (A*NA, A*HA) block-diag, action rows
    w2_bd = jnp.kron(eye_a, w2)               # (A*HA, A*HA) block-diag encoder L2
    b1_t = jnp.tile(b1, (1, A))               # (1, A*HA)
    b2_t = jnp.tile(b2, (1, A))
    wq1_s = wq1[:S]                            # (S, Qh)     state slice of Q L1
    wq1_e = jnp.tile(wq1[S:], (A, 1))          # (A*HA, Qh)  tiling folds the agent sum

    # pad the packed feature width up to a lane-aligned multiple of 128 (160 -> 256)
    P = max(128, ((AHA + 127) // 128) * 128)
    pad_c = P - AHA
    if pad_c:
        w1h_bd = jnp.pad(w1h_bd, ((0, 0), (0, pad_c)))
        w1a_bd = jnp.pad(w1a_bd, ((0, 0), (0, pad_c)))
        w2_bd = jnp.pad(w2_bd, ((0, pad_c), (0, pad_c)))
        b1_t = jnp.pad(b1_t, ((0, 0), (0, pad_c)))
        b2_t = jnp.pad(b2_t, ((0, 0), (0, pad_c)))
        wq1_e = jnp.pad(wq1_e, ((0, pad_c), (0, 0)))

    mdt = matmul_dtype
    # cast only the (tiny, VMEM-resident) weights; activations stay f32 and are
    # cast in-kernel inside mm() — avoids an extra HBM pass in the wrapper.
    w1h_bd, w1a_bd, w2_bd, wq1_s, wq1_e, wq2_c, wq3_r = (
        m.astype(mdt) for m in (w1h_bd, w1a_bd, w2_bd, wq1_s, wq1_e, wq2, wq3.T))
    b1_t, b2_t, bq1_f, bq2_f, bq3_f = (
        b.astype(jnp.float32) for b in (b1_t, b2_t, bq1, bq2, bq3))

    # activations: contiguous reshapes only — no concat, no pad, no astype
    hs = hidden_states.reshape(B, AH)
    ac = actions.reshape(B, ANA)
    st = state.reshape(B, S)

    kernel_args = (hs, ac, st,
                   w1h_bd, w1a_bd, b1_t, w2_bd, b2_t,
                   wq1_s, wq1_e, bq1_f,
                   wq2_c, bq2_f, wq3_r, bq3_f)

    def _param_spec(p):
        # full (small) parameter array, VMEM-resident for every grid step
        return pl.BlockSpec(p.shape, lambda i: (0, 0))

    in_specs = [
        pl.BlockSpec((tb_eff, AH), lambda i: (i, 0)),
        pl.BlockSpec((tb_eff, ANA), lambda i: (i, 0)),
        pl.BlockSpec((tb_eff, S), lambda i: (i, 0)),
    ] + [_param_spec(p) for p in kernel_args[3:]]

    out = pl.pallas_call(
        qtran_qbase_kernel,
        out_shape=jax.ShapeDtypeStruct((G, 1, tb_eff), jnp.float32),
        grid_spec=pltpu.PrefetchScalarGridSpec(
            num_scalar_prefetch=0,
            grid=(G,),
            in_specs=in_specs,
            out_specs=pl.BlockSpec((1, 1, tb_eff), lambda i: (i, 0, 0)),
        ),
        compiler_params=pltpu.CompilerParams(
            dimension_semantics=("parallel",)),
    )(*kernel_args)

    # rows beyond B (edge block, if B % tb_eff != 0) are garbage and sliced off
    return out.reshape(G * tb_eff, 1)[:B]  # (E*T, 1)


def reference_forward(state, hidden_states, actions, params):
    """Pure-JAX literal replica of the PyTorch QtranQBase forward."""
    (w1, b1, w2, b2, wq1, bq1, wq2, bq2, wq3, bq3) = params
    E, T, A, NA = actions.shape
    H = hidden_states.shape[-1]
    B = E * T

    ha = jnp.concatenate([hidden_states, actions], axis=-1).reshape(-1, H + NA)
    e = jnp.maximum(ha @ w1 + b1, 0.0) @ w2 + b2
    e = e.reshape(B, A, H + NA).sum(axis=-2)
    inputs = jnp.concatenate([state.reshape(B, -1), e], axis=-1)
    h1 = jnp.maximum(inputs @ wq1 + bq1, 0.0)
    h2 = jnp.maximum(h1 @ wq2 + bq2, 0.0)
    return h2 @ wq3 + bq3  # (B, 1)


def make_params(key, *, n_actions, rnn_hidden, state_shape, qtran_hidden):
    ha = rnn_hidden + n_actions
    q_in = state_shape + ha
    shapes = [
        (ha, ha), (1, ha),                                # hidden_action_encoding L1
        (ha, ha), (1, ha),                                # hidden_action_encoding L2
        (q_in, qtran_hidden), (1, qtran_hidden),          # q L1
        (qtran_hidden, qtran_hidden), (1, qtran_hidden),  # q L2
        (qtran_hidden, 1), (1, 1),                        # q L3
    ]
    keys = jax.random.split(key, len(shapes))
    return tuple(0.1 * jax.random.normal(k, s, dtype=jnp.float32)
                 for k, s in zip(keys, shapes))


if __name__ == "__main__":
    # small args consistent with the module
    n_actions, rnn_hidden, n_agents = 8, 32, 4
    state_shape, qtran_hidden = 24, 64
    episode_num, max_episode_len = 2, 8

    key = jax.random.PRNGKey(0)
    k_p, k_s, k_h, k_a = jax.random.split(key, 4)

    params = make_params(k_p, n_actions=n_actions, rnn_hidden=rnn_hidden,
                         state_shape=state_shape, qtran_hidden=qtran_hidden)

    state = jax.random.normal(
        k_s, (episode_num, max_episode_len, state_shape), dtype=jnp.float32)
    hidden_states = jax.random.normal(
        k_h, (episode_num, max_episode_len, n_agents, rnn_hidden), dtype=jnp.float32)
    actions = jax.random.normal(
        k_a, (episode_num, max_episode_len, n_agents, n_actions), dtype=jnp.float32)

    q_ref = reference_forward(state, hidden_states, actions, params)

    # exact-semantics f32 path (tight check)
    q_f32 = qtran_qbase_forward(state, hidden_states, actions, params,
                                matmul_dtype=jnp.float32)
    q_f32 = jax.block_until_ready(q_f32)
    assert q_f32.shape == (episode_num * max_episode_len, 1)
    assert jnp.allclose(q_f32, q_ref, atol=1e-3, rtol=1e-3), "f32 mismatch vs reference"

    # bf16-operand fast path (MXU-native), f32 accumulate (loose check)
    q_bf16 = qtran_qbase_forward(state, hidden_states, actions, params,
                                 matmul_dtype=jnp.bfloat16)
    q_bf16 = jax.block_until_ready(q_bf16)
    assert jnp.allclose(q_bf16, q_ref, atol=5e-2, rtol=5e-2), "bf16 mismatch vs reference"

    print("KERNEL_OK")
</pallas_src>

<mosaic_0001>
module attributes {stable_mosaic.version = 11 : i64} {
  func.func @qtran_qbase_kernel(%arg0: i32, %arg1: memref<8x128xf32, #tpu.memory_space<vmem>>, %arg2: memref<8x32xf32, #tpu.memory_space<vmem>>, %arg3: memref<8x24xf32, #tpu.memory_space<vmem>>, %arg4: memref<128x256xf32, #tpu.memory_space<vmem>>, %arg5: memref<32x256xf32, #tpu.memory_space<vmem>>, %arg6: memref<1x256xf32, #tpu.memory_space<vmem>>, %arg7: memref<256x256xf32, #tpu.memory_space<vmem>>, %arg8: memref<1x256xf32, #tpu.memory_space<vmem>>, %arg9: memref<24x64xf32, #tpu.memory_space<vmem>>, %arg10: memref<256x64xf32, #tpu.memory_space<vmem>>, %arg11: memref<1x64xf32, #tpu.memory_space<vmem>>, %arg12: memref<64x64xf32, #tpu.memory_space<vmem>>, %arg13: memref<1x64xf32, #tpu.memory_space<vmem>>, %arg14: memref<1x64xf32, #tpu.memory_space<vmem>>, %arg15: memref<1x1xf32, #tpu.memory_space<vmem>>, %arg16: memref<1x1x8xf32, #tpu.memory_space<vmem>>) attributes {dimension_semantics = [#tpu.dimension_semantics<parallel>], iteration_bounds = array<i64: 2>, scalar_prefetch = 0 : i64, scratch_operands = 0 : i64, tpu.core_type = #tpu.core_type<tc>, window_params = [{transform_indices = @transform_0, window_bounds = array<i64: 8, 128>}, {transform_indices = @transform_1, window_bounds = array<i64: 8, 32>}, {transform_indices = @transform_2, window_bounds = array<i64: 8, 24>}, {pipeline_mode = #tpu.pipeline_mode<synchronous>, transform_indices = @transform_3, window_bounds = array<i64: 128, 256>}, {pipeline_mode = #tpu.pipeline_mode<synchronous>, transform_indices = @transform_4, window_bounds = array<i64: 32, 256>}, {pipeline_mode = #tpu.pipeline_mode<synchronous>, transform_indices = @transform_5, window_bounds = array<i64: 1, 256>}, {pipeline_mode = #tpu.pipeline_mode<synchronous>, transform_indices = @transform_6, window_bounds = array<i64: 256, 256>}, {pipeline_mode = #tpu.pipeline_mode<synchronous>, transform_indices = @transform_7, window_bounds = array<i64: 1, 256>}, {pipeline_mode = #tpu.pipeline_mode<synchronous>, transform_indices = @transform_8, window_bounds = array<i64: 24, 64>}, {pipeline_mode = #tpu.pipeline_mode<synchronous>, transform_indices = @transform_9, window_bounds = array<i64: 256, 64>}, {pipeline_mode = #tpu.pipeline_mode<synchronous>, transform_indices = @transform_10, window_bounds = array<i64: 1, 64>}, {pipeline_mode = #tpu.pipeline_mode<synchronous>, transform_indices = @transform_11, window_bounds = array<i64: 64, 64>}, {pipeline_mode = #tpu.pipeline_mode<synchronous>, transform_indices = @transform_12, window_bounds = array<i64: 1, 64>}, {pipeline_mode = #tpu.pipeline_mode<synchronous>, transform_indices = @transform_13, window_bounds = array<i64: 1, 64>}, {pipeline_mode = #tpu.pipeline_mode<synchronous>, transform_indices = @transform_14, window_bounds = array<i64: 1, 1>}, {transform_indices = @transform_15, window_bounds = array<i64: 1, 1, 8>}]} {
    %c0 = arith.constant 0 : index
    %c0_0 = arith.constant 0 : index
    %0 = vector.load %arg1[%c0, %c0_0] : memref<8x128xf32, #tpu.memory_space<vmem>>, vector<8x128xf32>
    %c0_1 = arith.constant 0 : index
    %c0_2 = arith.constant 0 : index
    %1 = vector.load %arg2[%c0_1, %c0_2] : memref<8x32xf32, #tpu.memory_space<vmem>>, vector<8x32xf32>
    %c0_3 = arith.constant 0 : index
    %c0_4 = arith.constant 0 : index
    %2 = vector.load %arg3[%c0_3, %c0_4] : memref<8x24xf32, #tpu.memory_space<vmem>>, vector<8x24xf32>
    %c0_5 = arith.constant 0 : index
    %c0_6 = arith.constant 0 : index
    %3 = vector.load %arg4[%c0_5, %c0_6] : memref<128x256xf32, #tpu.memory_space<vmem>>, vector<128x256xf32>
    %cst = arith.constant dense<0.000000e+00> : vector<8x256xf32>
    %4 = tpu.matmul %0, %3, %cst {dimension_numbers = #tpu.dot_dimension_numbers<[1], [0], [0], [1], [0, 0, 1, 1], [], []>} : vector<8x128xf32>, vector<128x256xf32>, vector<8x256xf32> -> vector<8x256xf32>
    %c0_7 = arith.constant 0 : index
    %c0_8 = arith.constant 0 : index
    %5 = vector.load %arg5[%c0_7, %c0_8] : memref<32x256xf32, #tpu.memory_space<vmem>>, vector<32x256xf32>
    %cst_9 = arith.constant dense<0.000000e+00> : vector<8x256xf32>
    %6 = tpu.matmul %1, %5, %cst_9 {dimension_numbers = #tpu.dot_dimension_numbers<[1], [0], [0], [1], [0, 0, 1, 1], [], []>} : vector<8x32xf32>, vector<32x256xf32>, vector<8x256xf32> -> vector<8x256xf32>
    %7 = arith.addf %4, %6 : vector<8x256xf32>
    %c0_10 = arith.constant 0 : index
    %c0_11 = arith.constant 0 : index
    %8 = vector.load %arg6[%c0_10, %c0_11] : memref<1x256xf32, #tpu.memory_space<vmem>>, vector<1x256xf32>
    %9 = vector.broadcast %8 : vector<1x256xf32> to vector<8x256xf32>
    %10 = arith.addf %7, %9 : vector<8x256xf32>
    %cst_12 = arith.constant 0.000000e+00 : f32
    %11 = vector.broadcast %cst_12 : f32 to vector<8x256xf32>
    %12 = arith.maximumf %10, %11 : vector<8x256xf32>
    %c0_13 = arith.constant 0 : index
    %c0_14 = arith.constant 0 : index
    %13 = vector.load %arg7[%c0_13, %c0_14] : memref<256x256xf32, #tpu.memory_space<vmem>>, vector<256x256xf32>
    %cst_15 = arith.constant dense<0.000000e+00> : vector<8x256xf32>
    %14 = tpu.matmul %12, %13, %cst_15 {dimension_numbers = #tpu.dot_dimension_numbers<[1], [0], [0], [1], [0, 0, 1, 1], [], []>} : vector<8x256xf32>, vector<256x256xf32>, vector<8x256xf32> -> vector<8x256xf32>
    %c0_16 = arith.constant 0 : index
    %c0_17 = arith.constant 0 : index
    %15 = vector.load %arg8[%c0_16, %c0_17] : memref<1x256xf32, #tpu.memory_space<vmem>>, vector<1x256xf32>
    %16 = vector.broadcast %15 : vector<1x256xf32> to vector<8x256xf32>
    %17 = arith.addf %14, %16 : vector<8x256xf32>
    %c0_18 = arith.constant 0 : index
    %c0_19 = arith.constant 0 : index
    %18 = vector.load %arg9[%c0_18, %c0_19] : memref<24x64xf32, #tpu.memory_space<vmem>>, vector<24x64xf32>
    %cst_20 = arith.constant dense<0.000000e+00> : vector<8x64xf32>
    %19 = tpu.matmul %2, %18, %cst_20 {dimension_numbers = #tpu.dot_dimension_numbers<[1], [0], [0], [1], [0, 0, 1, 1], [], []>} : vector<8x24xf32>, vector<24x64xf32>, vector<8x64xf32> -> vector<8x64xf32>
    %c0_21 = arith.constant 0 : index
    %c0_22 = arith.constant 0 : index
    %20 = vector.load %arg10[%c0_21, %c0_22] : memref<256x64xf32, #tpu.memory_space<vmem>>, vector<256x64xf32>
    %cst_23 = arith.constant dense<0.000000e+00> : vector<8x64xf32>
    %21 = tpu.matmul %17, %20, %cst_23 {dimension_numbers = #tpu.dot_dimension_numbers<[1], [0], [0], [1], [0, 0, 1, 1], [], []>} : vector<8x256xf32>, vector<256x64xf32>, vector<8x64xf32> -> vector<8x64xf32>
    %22 = arith.addf %19, %21 : vector<8x64xf32>
    %c0_24 = arith.constant 0 : index
    %c0_25 = arith.constant 0 : index
    %23 = vector.load %arg11[%c0_24, %c0_25] : memref<1x64xf32, #tpu.memory_space<vmem>>, vector<1x64xf32>
    %24 = vector.broadcast %23 : vector<1x64xf32> to vector<8x64xf32>
    %25 = arith.addf %22, %24 : vector<8x64xf32>
    %cst_26 = arith.constant 0.000000e+00 : f32
    %26 = vector.broadcast %cst_26 : f32 to vector<8x64xf32>
    %27 = arith.maximumf %25, %26 : vector<8x64xf32>
    %c0_27 = arith.constant 0 : index
    %c0_28 = arith.constant 0 : index
    %28 = vector.load %arg12[%c0_27, %c0_28] : memref<64x64xf32, #tpu.memory_space<vmem>>, vector<64x64xf32>
    %cst_29 = arith.constant dense<0.000000e+00> : vector<8x64xf32>
    %29 = tpu.matmul %27, %28, %cst_29 {dimension_numbers = #tpu.dot_dimension_numbers<[1], [0], [0], [1], [0, 0, 1, 1], [], []>} : vector<8x64xf32>, vector<64x64xf32>, vector<8x64xf32> -> vector<8x64xf32>
    %c0_30 = arith.constant 0 : index
    %c0_31 = arith.constant 0 : index
    %30 = vector.load %arg13[%c0_30, %c0_31] : memref<1x64xf32, #tpu.memory_space<vmem>>, vector<1x64xf32>
    %31 = vector.broadcast %30 : vector<1x64xf32> to vector<8x64xf32>
    %32 = arith.addf %29, %31 : vector<8x64xf32>
    %cst_32 = arith.constant 0.000000e+00 : f32
    %33 = vector.broadcast %cst_32 : f32 to vector<8x64xf32>
    %34 = arith.maximumf %32, %33 : vector<8x64xf32>
    %c0_33 = arith.constant 0 : index
    %c0_34 = arith.constant 0 : index
    %35 = vector.load %arg14[%c0_33, %c0_34] : memref<1x64xf32, #tpu.memory_space<vmem>>, vector<1x64xf32>
    %cst_35 = arith.constant dense<0.000000e+00> : vector<1x8xf32>
    %36 = tpu.matmul %35, %34, %cst_35 {dimension_numbers = #tpu.dot_dimension_numbers<[1], [1], [0], [0], [0, 0, 1, 0], [], []>} : vector<1x64xf32>, vector<8x64xf32>, vector<1x8xf32> -> vector<1x8xf32>
    %c0_36 = arith.constant 0 : index
    %c0_37 = arith.constant 0 : index
    %37 = vector.load %arg15[%c0_36, %c0_37] : memref<1x1xf32, #tpu.memory_space<vmem>>, vector<1x1xf32>
    %38 = vector.broadcast %37 : vector<1x1xf32> to vector<1x8xf32>
    %39 = arith.addf %36, %38 : vector<1x8xf32>
    %40 = vector.shape_cast %39 : vector<1x8xf32> to vector<1x1x8xf32>
    %c0_38 = arith.constant 0 : index
    %c0_39 = arith.constant 0 : index
    %c0_40 = arith.constant 0 : index
    %41 = vector.load %arg16[%c0_38, %c0_39, %c0_40] : memref<1x1x8xf32, #tpu.memory_space<vmem>>, vector<1x1x8xf32>
    tpu.vector_store %arg16[%c0_38, %c0_39, %c0_40], %40 {strides = array<i32>} : memref<1x1x8xf32, #tpu.memory_space<vmem>>, vector<1x1x8xf32>,
    return
  }
  func.func @transform_0(%arg0: i32) -> (i32, i32) {
    %c0_i32 = arith.constant 0 : i32
    %c0_i32_0 = arith.constant 0 : i32
    return %arg0, %c0_i32 : i32, i32
  }
  func.func @transform_1(%arg0: i32) -> (i32, i32) {
    %c0_i32 = arith.constant 0 : i32
    %c0_i32_0 = arith.constant 0 : i32
    return %arg0, %c0_i32 : i32, i32
  }
  func.func @transform_2(%arg0: i32) -> (i32, i32) {
    %c0_i32 = arith.constant 0 : i32
    %c0_i32_0 = arith.constant 0 : i32
    return %arg0, %c0_i32 : i32, i32
  }
  func.func @transform_3(%arg0: i32) -> (i32, i32) {
    %c0_i32 = arith.constant 0 : i32
    %c0_i32_0 = arith.constant 0 : i32
    %c0_i32_1 = arith.constant 0 : i32
    return %c0_i32, %c0_i32_0 : i32, i32
  }
  func.func @transform_4(%arg0: i32) -> (i32, i32) {
    %c0_i32 = arith.constant 0 : i32
    %c0_i32_0 = arith.constant 0 : i32
    %c0_i32_1 = arith.constant 0 : i32
    return %c0_i32, %c0_i32_0 : i32, i32
  }
  func.func @transform_5(%arg0: i32) -> (i32, i32) {
    %c0_i32 = arith.constant 0 : i32
    %c0_i32_0 = arith.constant 0 : i32
    %c0_i32_1 = arith.constant 0 : i32
    return %c0_i32, %c0_i32_0 : i32, i32
  }
  func.func @transform_6(%arg0: i32) -> (i32, i32) {
    %c0_i32 = arith.constant 0 : i32
    %c0_i32_0 = arith.constant 0 : i32
    %c0_i32_1 = arith.constant 0 : i32
    return %c0_i32, %c0_i32_0 : i32, i32
  }
  func.func @transform_7(%arg0: i32) -> (i32, i32) {
    %c0_i32 = arith.constant 0 : i32
    %c0_i32_0 = arith.constant 0 : i32
    %c0_i32_1 = arith.constant 0 : i32
    return %c0_i32, %c0_i32_0 : i32, i32
  }
  func.func @transform_8(%arg0: i32) -> (i32, i32) {
    %c0_i32 = arith.constant 0 : i32
    %c0_i32_0 = arith.constant 0 : i32
    %c0_i32_1 = arith.constant 0 : i32
    return %c0_i32, %c0_i32_0 : i32, i32
  }
  func.func @transform_9(%arg0: i32) -> (i32, i32) {
    %c0_i32 = arith.constant 0 : i32
    %c0_i32_0 = arith.constant 0 : i32
    %c0_i32_1 = arith.constant 0 : i32
    return %c0_i32, %c0_i32_0 : i32, i32
  }
  func.func @transform_10(%arg0: i32) -> (i32, i32) {
    %c0_i32 = arith.constant 0 : i32
    %c0_i32_0 = arith.constant 0 : i32
    %c0_i32_1 = arith.constant 0 : i32
    return %c0_i32, %c0_i32_0 : i32, i32
  }
  func.func @transform_11(%arg0: i32) -> (i32, i32) {
    %c0_i32 = arith.constant 0 : i32
    %c0_i32_0 = arith.constant 0 : i32
    %c0_i32_1 = arith.constant 0 : i32
    return %c0_i32, %c0_i32_0 : i32, i32
  }
  func.func @transform_12(%arg0: i32) -> (i32, i32) {
    %c0_i32 = arith.constant 0 : i32
    %c0_i32_0 = arith.constant 0 : i32
    %c0_i32_1 = arith.constant 0 : i32
    return %c0_i32, %c0_i32_0 : i32, i32
  }
  func.func @transform_13(%arg0: i32) -> (i32, i32) {
    %c0_i32 = arith.constant 0 : i32
    %c0_i32_0 = arith.constant 0 : i32
    %c0_i32_1 = arith.constant 0 : i32
    return %c0_i32, %c0_i32_0 : i32, i32
  }
  func.func @transform_14(%arg0: i32) -> (i32, i32) {
    %c0_i32 = arith.constant 0 : i32
    %c0_i32_0 = arith.constant 0 : i32
    %c0_i32_1 = arith.constant 0 : i32
    return %c0_i32, %c0_i32_0 : i32, i32
  }
  func.func @transform_15(%arg0: i32) -> (i32, i32, i32) {
    %c0_i32 = arith.constant 0 : i32
    %c0_i32_0 = arith.constant 0 : i32
    %c0_i32_1 = arith.constant 0 : i32
    return %arg0, %c0_i32, %c0_i32_0 : i32, i32, i32
  }
}

</mosaic_0001>

<bundles_post_ra>
// kernel: tpu_custom_call.1
= control target key start
LH: loop header
LB: loop body
LE: loop exit
PB: predicated region body
PF: predicated region fallthrough
CT: control target
= control target key end

     0   :  { %s2638_s0 = inlined_call_operand.hbm [shape: f32[16,128], index: 0, kind: input, shape index: {}]   ;;  %s2639_s1 = inlined_call_operand.hbm [shape: f32[16,32], index: 1, kind: input, shape index: {}]   ;;  %s2640_s2 = inlined_call_operand.hbm [shape: f32[16,24], index: 2, kind: input, shape index: {}]   ;;  %s2641_s3 = inlined_call_operand.vmem [shape: f32[128,256], index: 3, kind: input, shape index: {}]   ;;  %s2642_s4 = inlined_call_operand.vmem [shape: f32[32,256], index: 4, kind: input, shape index: {}]   ;;  %s2643_s5 = inlined_call_operand.vmem [shape: f32[1,256], index: 5, kind: input, shape index: {}]   ;;  %s2644_s6 = inlined_call_operand.hbm [shape: f32[256,256], index: 6, kind: input, shape index: {}]   ;;  %s2645_s7 = inlined_call_operand.vmem [shape: f32[1,256], index: 7, kind: input, shape index: {}]   ;;  %s2646_s8 = inlined_call_operand.vmem [shape: f32[24,64], index: 8, kind: input, shape index: {}]   ;;  %s2647_s9 = inlined_call_operand.vmem [shape: f32[256,64], index: 9, kind: input, shape index: {}]   ;;  %s2648_s10 = inlined_call_operand.vmem [shape: f32[1,64], index: 10, kind: input, shape index: {}]   ;;  %s2649_s11 = inlined_call_operand.vmem [shape: f32[64,64], index: 11, kind: input, shape index: {}]   ;;  %s2650_s12 = inlined_call_operand.vmem [shape: f32[1,64], index: 12, kind: input, shape index: {}]   ;;  %s2651_s13 = inlined_call_operand.vmem [shape: f32[1,64], index: 13, kind: input, shape index: {}]   ;;  %s2652_s14 = inlined_call_operand.<no memory space> [shape: f32[1,1], index: 14, kind: input, shape index: {}]   ;;  %s2653_s15 = inlined_call_operand.hbm [shape: f32[2,1,8], index: 15, kind: output, shape index: {}]  }
   0x1   :  { %2675 = sst [smem:[#allocation22_spill]] %s2639_s1  ;;  %v20_v0 = vstv %s2652_s14 }
   0x2   :  { %2676 = sst [smem:[#allocation23_spill]] %s2643_s5  ;;  %21 = vst [vmem:[#allocation2] sm:$0x1] %v20_v0 }
   0x3   :  { %2677 = sst [smem:[#allocation24_spill]] %s2645_s7 }
   0x4   :  { %2678 = sst [smem:[#allocation25_spill]] %s2646_s8 }
   0x5   :  { %2679 = sst [smem:[#allocation26_spill]] %s2647_s9 }
   0x6   :  { %2680 = sst [smem:[#allocation27_spill]] %s2648_s10 }
   0x7   :  { %2681 = sst [smem:[#allocation28_spill]] %s2649_s11 }
   0x8   :  { %2682 = sst [smem:[#allocation29_spill]] %s2650_s12 }
   0x9   :  { %2683 = sst [smem:[#allocation30_spill]] %s2651_s13 }
   0xa   :  { %2684 = sst [smem:[#allocation31_spill]] %s2653_s15 }
   0xb   :  { %22 = vsyncpa [#allocation4], 0 }
   0xc   :  { %24 = vsyncpa [#allocation4 + $0x1], 0 }
   0xd   :  { %25 = vsyncpa [#allocation7], 0 }
   0xe   :  { %27 = vsyncpa [#allocation7 + $0x1], 0 }
   0xf   :  { %28 = vsyncpa [#allocation10], 0 }
  0x10   :  { %29 = vsyncpa [#allocation5], 0 }
  0x11   :  { %31 = vsyncpa [#allocation5 + $0x1], 0  ;;  %s2071_s20 = smov 0   ;;  %s2073_s21 = smov 0  }
  0x12   :  { %s2075_s22 = smov 0   ;;  %s2077_s23 = smov 0  }
  0x13 LB: > { %2685 = sst [smem:[#allocation16_spill]] %s1963_s20  ;;  %s2092_s14 = sadd.s32 1, %s1975_s23   ;;  %s1975_s23 = sphi %s2077_s23, %s2724_s23   ;;  %s1971_s22 = sphi %s2075_s22, %s2728_s22   ;;  %s1967_s21 = sphi %s2073_s21, %s2727_s21   ;;  %s1963_s20 = sphi %s2071_s20, %s2726_s20  }
  0x14   : > { %2686 = sst [smem:[#allocation17_spill]] %s1975_s23  ;;  %s44_s24 = sadd.s32 1, %s1971_s22 }
  0x15   : > { %2687 = sst [smem:[#allocation18_spill]] %s2092_s14  ;;  %s41_s25 = ssub.s32 %s1975_s23, %s2092_s14 }
  0x16   : > { %p2658_p0 = scmp.ne.s32.totalorder %s1971_s22, %s1967_s21  ;;  %p42_p1 = scmp.eq.s32.totalorder %s41_s25, 0 }
  0x17   : > { %p52_p2 = scmp.eq.s32.totalorder %s1975_s23, 0  ;;  %p1740_p4 = scmp.lt.s32.totalorder %s1975_s23, 2 }
  0x18   : > { %s2103_s26 = scalar_select %p42_p1, %s1971_s22, %s44_s24  }
  0x19   : > { %p53_p5 = por %p52_p2, %p2658_p0  ;;  %s2654_s27 = sand.u32 1, %s1971_s22  }
  0x1a   : > { %2688 = sst [smem:[#allocation19_spill]] %s2103_s26  ;;  %s2111_s28 = sshll.u32 %s2654_s27, 3 }
  0x1b   : > { %s2114_s29 = sshll.u32 %s1975_s23, 7  ;;  %p2116_p6 = pnand %p1740_p4, %p53_p5 }
  0x1c   : > { %s475_s16 = sand.u32 1, %s1975_s23   ;;  %s2690_s1 = sld [smem:[#allocation22_spill]] }
  0x1d   : > { %s2689_s30 = scalar_select %p2116_p6, 1, 0 }
  0x1e   : > { %s479_s24 = scalar_lea.vmem [#allocation6], %s2111_s28  ;;  %s2130_s27 = scalar_lea.sflag [#allocation7], %s475_s16 }
  0x1f   : > { %s486_s25 = sshll.u32 %s479_s24, 4  ;;  %p2136_p8 = pneg %p2116_p6  ;;  %s2128_s25 = int_to_ptr.vmem [resolvable:$true] %s486_s25 }
  0x21   : > { %s2691_s14 = scalar_select %p2136_p8, 1, 0 }
  0x22   : > { %s2125_s19 = scalar_lea.hbm %s2690_s1, %s2114_s29  ;;  %s1788_s15 = scalar_lea.hbm %s2690_s1, 256 }
  0x23   : > { %s1783_s26 = scalar_lea.hbm %s2125_s19, 128  ;;  %p1789_p11 = scmp.lt.u32.totalorder %s2125_s19, %s2690_s1 }
  0x24   : > { %p1784_p7 = scmp.ne.s32.totalorder %s2125_s19, %s1783_s26  ;;  %p1790_p12 = scmp.lt.u32.totalorder %s1788_s15, %s1783_s26 }
  0x25   : > { %p1792_p1 = scmp.lt.u32.totalorder %s1783_s26, %s2125_s19 }
  0x26   : > { %p1786_p9 = pnand %p2136_p8, %p1784_p7  ;;  %p1791_p13 = por %p1790_p12, %p1789_p11 }
  0x28   : > { %p1787_p10 = pneg %p1786_p9  ;;  %p1793_p2 = por %p1792_p1, %p1791_p13 }
  0x2a   : > { %p1794_p4 = pnand %p1793_p2, %p1787_p10 }
  0x2c   : > { %1797 = shalt.err (!%p1794_p4)
}
  0x2d   : > { %s1798_s16 = scalar_lea.vmem %s2128_s25, 128  ;;  %s1977_s17 = smov [#allocation6]  }
  0x2e   : > { %p1799_p5 = scmp.ne.s32.totalorder %s2128_s25, %s1798_s16  ;;  %s1803_s18 = sshll.u32 %s1977_s17, 4  ;;  %s1804_s18 = int_to_ptr.vmem [resolvable:$false] %s1803_s18 }
  0x2f   : > { %s1805_s13 = scalar_lea.vmem %s1804_s18, 256  ;;  %p1806_p3 = scmp.lt.s32.totalorder %s2128_s25, %s1804_s18 }
  0x30   : > { %p1801_p7 = pnand %p1799_p5, %p2136_p8  ;;  %p1807_p0 = scmp.lt.s32.totalorder %s1805_s13, %s1798_s16 }
  0x32   : > { %p1802_p9 = pneg %p1801_p7  ;;  %p1808_p11 = por %p1807_p0, %p1806_p3 }
  0x34   : > { %p1809_p12 = pnand %p1808_p11, %p1802_p9 }
  0x36   : > { %1812 = shalt.err (!%p1809_p12)
}
  0x37   : > { %1731 = dma.hbm_to_vmem [thread:$0]  (!%p2116_p6), %s2125_s19, 128, %s2128_s25, %s2130_s27  }
  0x38   : > { %s2161_s15 = sadd.s32 4294967295, %s1975_s23   ;;  %s1448_s26 = sadd.s32 4294967294, %s1975_s23  }
  0x39   : > { %p57_p0 = scmp.ne.s32.totalorder %s1967_s21, %s1963_s20  ;;  %p2666_p3 = scmp.eq.s32.totalorder %s2161_s15, 0 }
  0x3a   : > { %p385_p10 = scmp.eq.s32.totalorder %s2161_s15, 1  ;;  %p391_p13 = scmp.eq.s32.totalorder %s1448_s26, 1 }
  0x3b   : > { %p2170_p1 = por %p2666_p3, %p57_p0  ;;  %p1449_p2 = scmp.ge.s32.totalorder %s1975_s23, 1 }
  0x3c   : > { %p2693_p4 = scmp.ne.s32.totalorder %s1971_s22, %s1967_s21  ;;  %p2182_p7 = por %p391_p13, %p57_p0 }
  0x3d   : > { %s2692_s24 = scalar_select %p2170_p1, 1, 0 }
  0x3e   : > { %p2178_p5 = por %p385_p10, %p2693_p4  ;;  %p398_p9 = scmp.lt.s32.totalorder %s1975_s23, 3 }
  0x3f   : > { %s2696_s25 = scalar_select %p2182_p7, 1, 0 }
  0x40   : > { %s2694_s19 = scalar_select %p2178_p5, 1, 0 }
  0x41   : > { %2697 = sst [smem:[#allocation21_spill]] %s2696_s25  ;;  %p2187_p11 = pnand %p1449_p2, %p398_p9 }
  0x42   : > { %2695 = sst [smem:[#allocation20_spill]] %s2694_s19  ;;  %s1978_s17 = smov [#allocation9]  }
  0x43   : > { %s2698_s16 = scalar_select %p2187_p11, 1, 0 }
  0x44   : > { %s419_s18 = sshll.u32 %s1978_s17, 4  ;;  %p1721_p12 = pneg %p2187_p11  ;;  %s2191_s18 = int_to_ptr.vmem [resolvable:$true] %s419_s18 }
  0x45   : > { %s2199_s1 = scalar_lea.hbm %s2638_s0, %s2114_s29  ;;  %s461_s23 = scalar_lea.vmem [#allocation3], %s2111_s28 }
  0x46   : > { %p2203_p0 = pnand %p1721_p12, %p2666_p3  ;;  %s468_s20 = sshll.u32 %s461_s23, 4  ;;  %s2208_s20 = int_to_ptr.vmem [resolvable:$true] %s468_s20 }
  0x47   : > { %s2214_s12 = scalar_lea.hbm %s2640_s2, %s2114_s29  ;;  %s1813_s13 = scalar_lea.hbm %s2644_s6, 8192 }
  0x48   : > { %p1814_p10 = scmp.ne.s32.totalorder %s2644_s6, %s1813_s13  ;;  %p1815_p13 = pneg %p2203_p0 }
  0x49   : > { %p1820_p9 = scmp.lt.u32.totalorder %s1813_s13, %s2644_s6 }
  0x4a   : > { %p1816_p2 = pnand %p1815_p13, %p1814_p10 }
  0x4c   : > { %p1817_p4 = pneg %p1816_p2 }
  0x4e   : > { %p1822_p12 = pnand %p1820_p9, %p1817_p4 }
  0x50   : > { %1825 = shalt.err (!%p1822_p12)
}
  0x51   : > { %s1826_s29 = scalar_lea.vmem %s2191_s18, 8192  ;;  %p1834_p1 = scmp.lt.s32.totalorder %s2191_s18, %s2191_s18 }
  0x52   : > { %p1827_p3 = scmp.ne.s32.totalorder %s2191_s18, %s1826_s29  ;;  %p1835_p11 = scmp.lt.s32.totalorder %s1826_s29, %s1826_s29 }
  0x54   : > { %p1829_p7 = pnand %p1827_p3, %p1815_p13  ;;  %p1836_p6 = por %p1835_p11, %p1834_p1 }
  0x56   : > { %p1830_p5 = pneg %p1829_p7 }
  0x58   : > { %p1837_p8 = pnand %p1836_p6, %p1830_p5 }
  0x5a   : > { %1840 = shalt.err (!%p1837_p8)
}
  0x5b   : > { %s1979_s7 = smov 256   ;;  %s1980_s8 = smov 16  }
  0x5c   : > { %1724 = dma.hbm_to_vmem [thread:$0]  (!%p2203_p0), %s2644_s6, 8192, %s2191_s18, [#allocation10], %s1979_s7, %s1979_s7, %s1980_s8  }
  0x5d   : > { %s2700_s19 = sand.u32 1, %s1971_s22   ;;  %s1841_s13 = scalar_lea.hbm %s2199_s1, 128 }
  0x5e   : > { %s458_s17 = scalar_lea.sflag [#allocation4], %s2700_s19  ;;  %p1842_p6 = scmp.ne.s32.totalorder %s2199_s1, %s1841_s13 }
  0x5f   : > { %p2701_p8 = scmp.ne.s32.totalorder %s2691_s14, 0  ;;  %s1846_s29 = scalar_lea.hbm %s2638_s0, 256 }
  0x60   : > { %p1847_p5 = scmp.lt.u32.totalorder %s2199_s1, %s2638_s0  ;;  %p1848_p7 = scmp.lt.u32.totalorder %s1846_s29, %s1841_s13 }
  0x61   : > { %p1844_p3 = pnand %p1842_p6, %p2701_p8  ;;  %p1850_p10 = scmp.lt.u32.totalorder %s1841_s13, %s2199_s1 }
  0x62   : > { %p1849_p11 = por %p1848_p7, %p1847_p5 }
  0x63   : > { %p1845_p1 = pneg %p1844_p3 }
  0x64   : > { %p1851_p13 = por %p1850_p10, %p1849_p11 }
  0x66   : > { %p1852_p0 = pnand %p1851_p13, %p1845_p1 }
  0x68   : > { %1855 = shalt.err (!%p1852_p0)
}
  0x69   : > { %s1856_s25 = scalar_lea.vmem %s2208_s20, 128  ;;  %s1981_s18 = smov [#allocation3]  }
  0x6a   : > { %p1857_p2 = scmp.ne.s32.totalorder %s2208_s20, %s1856_s25  ;;  %s1861_s7 = sshll.u32 %s1981_s18, 4  ;;  %s1862_s7 = int_to_ptr.vmem [resolvable:$false] %s1861_s7 }
  0x6b   : > { %s1863_s5 = scalar_lea.vmem %s1862_s7, 256  ;;  %p1864_p12 = scmp.lt.s32.totalorder %s2208_s20, %s1862_s7 }
  0x6c   : > { %p1859_p4 = pnand %p1857_p2, %p2701_p8  ;;  %p1865_p6 = scmp.lt.s32.totalorder %s1863_s5, %s1856_s25 }
  0x6e   : > { %p1860_p9 = pneg %p1859_p4  ;;  %p1866_p3 = por %p1865_p6, %p1864_p12 }
  0x70   : > { %p1867_p5 = pnand %p1866_p3, %p1860_p9 }
  0x72   : > { %1870 = shalt.err (!%p1867_p5)
}
  0x73   : > { %p2702_p1 = scmp.ne.s32.totalorder %s2689_s30, 0  ;;  %s497_s9 = scalar_lea.vmem [#allocation8], %s2111_s28 }
  0x74   : > { %s504_s8 = sshll.u32 %s497_s9, 4  ;;  %s1871_s10 = scalar_lea.hbm %s2214_s12, 128  ;;  %s505_s8 = int_to_ptr.vmem [resolvable:$true] %s504_s8 }
  0x75   : > { %1728 = dma.hbm_to_vmem [thread:$0]  (!%p2702_p1), %s2199_s1, 128, %s2208_s20, %s458_s17  }
  0x76   : > { %p1872_p7 = scmp.ne.s32.totalorder %s2214_s12, %s1871_s10  ;;  %s1876_s13 = scalar_lea.hbm %s2640_s2, 256 }
  0x77   : > { %p1877_p13 = scmp.lt.u32.totalorder %s2214_s12, %s2640_s2  ;;  %p1878_p0 = scmp.lt.u32.totalorder %s1876_s13, %s1871_s10 }
  0x78   : > { %p1874_p11 = pnand %p1872_p7, %p2701_p8  ;;  %p1880_p4 = scmp.lt.u32.totalorder %s1871_s10, %s2214_s12 }
  0x79   : > { %p1879_p2 = por %p1878_p0, %p1877_p13 }
  0x7a   : > { %p1875_p10 = pneg %p1874_p11 }
  0x7b   : > { %p1881_p9 = por %p1880_p4, %p1879_p2 }
  0x7d   : > { %p1882_p12 = pnand %p1881_p9, %p1875_p10 }
  0x7f   : > { %1885 = shalt.err (!%p1882_p12)
}
  0x80   : > { %s1886_s1 = scalar_lea.vmem %s505_s8, 128  ;;  %s1982_s20 = smov [#allocation8]  }
  0x81   : > { %p1887_p6 = scmp.ne.s32.totalorder %s505_s8, %s1886_s1  ;;  %s1891_s28 = sshll.u32 %s1982_s20, 4  ;;  %s1892_s28 = int_to_ptr.vmem [resolvable:$false] %s1891_s28 }
  0x82   : > { %s1893_s17 = scalar_lea.vmem %s1892_s28, 256  ;;  %p1894_p7 = scmp.lt.s32.totalorder %s505_s8, %s1892_s28 }
  0x83   : > { %p1889_p3 = pnand %p1887_p6, %p2701_p8  ;;  %p1895_p11 = scmp.lt.s32.totalorder %s1893_s17, %s1886_s1 }
  0x85   : > { %p1890_p5 = pneg %p1889_p3  ;;  %p1896_p1 = por %p1895_p11, %p1894_p7 }
  0x87   : > { %p1897_p0 = pnand %p1896_p1, %p1890_p5 }
  0x89   : > { %1900 = shalt.err (!%p1897_p0)
}
  0x8a   : > { %p2703_p13 = scmp.ne.s32.totalorder %s2689_s30, 0  ;;  %p2704_p10 = scmp.ne.s32.totalorder %s2698_s16, 0 }
  0x8b   : > { %s2282_s14 = sand.u32 (!%p2704_p10), 1, %s1967_s21   ;;  %p2705_p8 = scmp.ne.s32.totalorder (!%p2704_p10), %s2692_s24, 0 }
  0x8c   : > { %1734 = dma.hbm_to_vmem [thread:$0]  (!%p2703_p13), %s2214_s12, 128, %s505_s8, %s2130_s27  }
  0x8d   : > { %513 = sbr.rel (%p2704_p10) target bundleno = 1303 (0x517), region = 80  ;;  %s2285_s29 = sshll.u32 (!%p2704_p10), %s2282_s14, 3 }
  0x8e   : > { %s516_s25 = scalar_lea.sflag (!%p2704_p10), [#allocation4], %s2282_s14  ;;  %s519_s18 = scalar_lea.vmem (!%p2704_p10), [#allocation3], %s2285_s29 }
  0x94   : > { %1946 = dma.done.wait (%p2705_p8), %s516_s25, 128  }
  0x95   : > { %1948 = vsyncadd (%p2705_p8), %s516_s25, 4294967168  ;;  %s524_s12 = sand.u32 1, %s2161_s15   ;;  %s528_s30 = scalar_lea.vmem [#allocation6], %s2285_s29 }
  0x96   : > { %s525_s27 = scalar_lea.sflag [#allocation7], %s524_s12 }
  0x97   : > { %1950 = dma.done.wait (%p2705_p8), %s525_s27, 256  }
  0x98   : > { %1952 = vsyncadd (%p2705_p8), %s525_s27, 4294967040  ;;  %s537_s16 = scalar_lea.vmem [#allocation8], %s2285_s29  ;;  %p2706_p1 = scmp.eq.s32.totalorder %s2161_s15, 0 }
  0x9a   : > { %1954 = dma.done.wait (%p2706_p1), [#allocation10], 8192   ;;  %p2707_p2 = pmov %p2706_p1 }
  0x9b   : > { %v1983_v1 = vmov 0.0   ;;  %v633_v2 = vld [vmem:[%s2642_s4 + $0x8] sm:$0xff]  ;;  %v635_v3 = vld [vmem:[%s2642_s4 + $0x18] sm:$0xff]  ;;  %v632_v4 = vld [vmem:[%s2642_s4] sm:$0xff]  ;;  %vm640_vm0 = vcmask 261120   ;;  %s2708_s11 = sld [smem:[#allocation26_spill]] }
  0x9c   : > { %1956 = vsyncadd (%p2707_p2), [#allocation10], 4294959104  ;;  %708 = vmatprep.mubr.f32.mxu0 %v1983_v1  ;;  %v1556_v5 = vpack.c.bf16 %v635_v3, %v633_v2  ;;  %v634_v6 = vld [vmem:[%s2642_s4 + $0x10] sm:$0xff]  ;;  %v637_v7 = vld [vmem:[%s2642_s4 + $0x28] sm:$0xff]  ;;  %s2709_s10 = sld [smem:[#allocation23_spill]]  ;;  %vm1985_vm1 = vmmov 0  }
  0x9d   : > { %v639_v8 = vld [vmem:[%s2642_s4 + $0x38] sm:$0xff]  ;;  %v1558_v9 = vpack.c.bf16 %v634_v6, %v632_v4  ;;  %v636_v11 = vld [vmem:[%s2642_s4 + $0x20] sm:$0xff]  ;;  %v638_v12 = vld [vmem:[%s2642_s4 + $0x30] sm:$0xff]  ;;  %s2710_s27 = sld [smem:[#allocation28_spill]]  ;;  %s2711_s8 = sld [smem:[#allocation24_spill]]  ;;  %vm1054_vm2 = vcmask 195584  }
  0x9e   : > { %v1560_v10 = vpack.c.bf16 %v639_v8, %v637_v7  ;;  %v601_v13 = vld [vmem:[%s2641_s3 + $0x8] sm:$0xff]  ;;  %1557 = vmatprep.subr.bf16.mxu0 %v1556_v5  ;;  %v603_v14 = vld [vmem:[%s2641_s3 + $0x18] sm:$0xff]  ;;  %v1562_v15 = vpack.c.bf16 %v638_v12, %v636_v11  ;;  %v600_v17 = vld [vmem:[%s2641_s3] sm:$0xff]  ;;  %vm1152_vm3 = vcmask 523264   ;;  %s2714_s26 = sld [smem:[#allocation29_spill]]  ;;  %s2715_s20 = sld [smem:[#allocation30_spill]] }
  0x9f   : > { %1559 = vmatpush1.bf16.msra.mxu0 %v1558_v9  ;;  %v1564_v16 = vpack.c.bf16 %v603_v14, %v601_v13  ;;  %v602_v18 = vld [vmem:[%s2641_s3 + $0x10] sm:$0xff]  ;;  %v605_v19 = vld [vmem:[%s2641_s3 + $0x28] sm:$0xff]  ;;  %v607_v20 = vld [vmem:[%s2641_s3 + $0x38] sm:$0xff]  ;;  %s2716_s28 = sld [smem:[#allocation20_spill]]  ;;  %s1470_s17 = sshll.u32 %s2161_s15, 4  ;;  %vm1314_vm4 = vcmask 57344  }
  0xa0   : > { %1561 = vmatprep.subr.bf16.mxu0 %v1560_v10  ;;  %v598_v21 = vld [vmem:[%s528_s30] sm:$0xff]  ;;  %v1566_v22 = vpack.c.bf16 %v602_v18, %v600_v17  ;;  %v1568_v23 = vpack.c.bf16 %v607_v20, %v605_v19  ;;  %v609_v26 = vld [vmem:[%s2641_s3 + $0x48] sm:$0xff]  ;;  %s596_s29 = scalar_lea.vmem [#allocation11], %s2282_s14  ;;  %s2717_s30 = sld [smem:[#allocation31_spill]] }
  0xa1   : > { %v604_v24 = vld [vmem:[%s2641_s3 + $0x20] sm:$0xff]  ;;  %v606_v25 = vld [vmem:[%s2641_s3 + $0x30] sm:$0xff]  ;;  %v611_v27 = vld [vmem:[%s2641_s3 + $0x58] sm:$0xff]  ;;  %s1317_s5 = scalar_lea.sflag [#allocation5], %s2282_s14  ;;  %s1987_s15 = smov [#allocation11]  }
  0xa2   : > { %v1570_v28 = vpack.c.bf16 %v606_v25, %v604_v24  ;;  %v608_v29 = vld [vmem:[%s2641_s3 + $0x40] sm:$0xff]  ;;  %v1572_v30 = vpack.c.bf16 %v611_v27, %v609_v26  ;;  %v610_v31 = vld [vmem:[%s2641_s3 + $0x50] sm:$0xff]  ;;  %v613_v32 = vld [vmem:[%s2641_s3 + $0x68] sm:$0xff] }
  0xa3   : > { %1563 = vmatpush1.bf16.msra.mxu0 %v1562_v15  ;;  %v615_v33 = vld [vmem:[%s2641_s3 + $0x78] sm:$0xff]  ;;  %v805_v35 = vld [vmem:[#allocation9 + $0x18] sm:$0xff]  ;;  %v804_v38 = vld [vmem:[#allocation9 + $0x10] sm:$0xff]  ;;  %v1574_v41 = vpack.c.bf16 %v610_v31, %v608_v29 }
  0xa4   : > { %1565 = vmatprep.subr.bf16.mxu0 %v1564_v16  ;;  %v803_v34 = vld [vmem:[#allocation9 + $0x8] sm:$0xff]  ;;  %v802_v36 = vld [vmem:[#allocation9] sm:$0xff]  ;;  %v809_v40 = vld [vmem:[#allocation9 + $0x38] sm:$0xff]  ;;  %v1576_v47 = vpack.c.bf16 %v615_v33, %v613_v32 }
  0xa5   : > { %v1596_v37 = vpack.c.bf16 %v805_v35, %v803_v34  ;;  %v807_v39 = vld [vmem:[#allocation9 + $0x28] sm:$0xff]  ;;  %v1598_v42 = vpack.c.bf16 %v804_v38, %v802_v36  ;;  %v806_v44 = vld [vmem:[#allocation9 + $0x20] sm:$0xff]  ;;  %v808_v45 = vld [vmem:[#allocation9 + $0x30] sm:$0xff]  ;;  %p2718_p9 = scmp.ne.s32.totalorder %s2716_s28, 0 }
  0xa6   : > { %1463 = vmatmul.mubr.msk.f32.vlgmr.msra.gmra.mrb[0].mxu0 %vm640_vm0, %v598_v21  ;;  %v1600_v43 = vpack.c.bf16 %v809_v40, %v807_v39  ;;  %v811_v46 = vld [vmem:[#allocation9 + $0x48] sm:$0xff]  ;;  %v614_v49 = vld [vmem:[%s2641_s3 + $0x70] sm:$0xff]  ;;  %v617_v51 = vld [vmem:[%s2641_s3 + $0x88] sm:$0xff]  ;;  %v1602_v53 = vpack.c.bf16 %v808_v45, %v806_v44  ;;  %s2594_s7 = scalar_lea.hbm %s2717_s30, %s1470_s17 }
  0xa7   : > { %1567 = vmatpush1.bf16.msra.mxu0 %v1566_v22  ;;  %779 = vmatprep.mubr.f32.mxu0 %v1983_v1  ;;  %v612_v48 = vld [vmem:[%s2641_s3 + $0x60] sm:$0xff]  ;;  %v813_v50 = vld [vmem:[#allocation9 + $0x58] sm:$0xff]  ;;  %v619_v52 = vld [vmem:[%s2641_s3 + $0x98] sm:$0xff] }
  0xa8   : > { %1569 = vmatprep.subr.bf16.mxu0 %v1568_v23  ;;  %1597 = vmatprep.subr.bf16.mxu1 %v1596_v37  ;;  %v1604_v54 = vpack.c.bf16 %v813_v50, %v811_v46  ;;  %v810_v55 = vld [vmem:[#allocation9 + $0x40] sm:$0xff]  ;;  %v812_v56 = vld [vmem:[#allocation9 + $0x50] sm:$0xff]  ;;  %v1578_v57 = vpack.c.bf16 %v614_v49, %v612_v48  ;;  %v815_v58 = vld [vmem:[#allocation9 + $0x68] sm:$0xff]  ;;  %v1580_v60 = vpack.c.bf16 %v619_v52, %v617_v51 }
  0xa9   : > { %1599 = vmatpush1.bf16.msra.mxu1 %v1598_v42  ;;  %v817_v59 = vld [vmem:[#allocation9 + $0x78] sm:$0xff]  ;;  %v616_v61 = vld [vmem:[%s2641_s3 + $0x80] sm:$0xff]  ;;  %v623_v0 = vld [vmem:[%s2641_s3 + $0xb8] sm:$0xff]  ;;  %v1606_v2 = vpack.c.bf16 %v812_v56, %v810_v55 }
  0xaa   : > { %1601 = vmatprep.subr.bf16.mxu1 %v1600_v43  ;;  %v618_v62 = vld [vmem:[%s2641_s3 + $0x90] sm:$0xff]  ;;  %v621_v63 = vld [vmem:[%s2641_s3 + $0xa8] sm:$0xff]  ;;  %v1608_v3 = vpack.c.bf16 %v817_v59, %v815_v58  ;;  %v819_v7 = vld [vmem:[#allocation9 + $0x88] sm:$0xff] }
  0xab   : > { %1571 = vmatpush1.bf16.msra.mxu0 %v1570_v28  ;;  %v814_v4 = vld [vmem:[#allocation9 + $0x60] sm:$0xff]  ;;  %v816_v5 = vld [vmem:[#allocation9 + $0x70] sm:$0xff]  ;;  %v1582_v6 = vpack.c.bf16 %v618_v62, %v616_v61  ;;  %v821_v8 = vld [vmem:[#allocation9 + $0x98] sm:$0xff]  ;;  %v1584_v9 = vpack.c.bf16 %v623_v0, %v621_v63 }
  0xac   : > { %1573 = vmatprep.subr.bf16.mxu0 %v1572_v30  ;;  %v620_v10 = vld [vmem:[%s2641_s3 + $0xa0] sm:$0xff]  ;;  %v622_v11 = vld [vmem:[%s2641_s3 + $0xb0] sm:$0xff]  ;;  %v625_v12 = vld [vmem:[%s2641_s3 + $0xc8] sm:$0xff]  ;;  %v1610_v14 = vpack.c.bf16 %v816_v5, %v814_v4  ;;  %v1612_v15 = vpack.c.bf16 %v821_v8, %v819_v7 }
  0xad   : > { %1603 = vmatpush1.bf16.msra.mxu1 %v1602_v53  ;;  %v627_v13 = vld [vmem:[%s2641_s3 + $0xd8] sm:$0xff]  ;;  %v820_v17 = vld [vmem:[#allocation9 + $0x90] sm:$0xff]  ;;  %v1586_v18 = vpack.c.bf16 %v622_v11, %v620_v10  ;;  %v825_v20 = vld [vmem:[#allocation9 + $0xb8] sm:$0xff] }
  0xae   : > { %1605 = vmatprep.subr.bf16.mxu1 %v1604_v54  ;;  %v818_v16 = vld [vmem:[#allocation9 + $0x80] sm:$0xff]  ;;  %v823_v19 = vld [vmem:[#allocation9 + $0xa8] sm:$0xff]  ;;  %v1588_v21 = vpack.c.bf16 %v627_v13, %v625_v12  ;;  %v629_v24 = vld [vmem:[%s2641_s3 + $0xe8] sm:$0xff] }
  0xaf   : > { %1575 = vmatpush1.bf16.msra.mxu0 %v1574_v41  ;;  %v624_v22 = vld [vmem:[%s2641_s3 + $0xc0] sm:$0xff]  ;;  %v626_v23 = vld [vmem:[%s2641_s3 + $0xd0] sm:$0xff]  ;;  %v631_v25 = vld [vmem:[%s2641_s3 + $0xf8] sm:$0xff]  ;;  %v1614_v26 = vpack.c.bf16 %v820_v17, %v818_v16  ;;  %v1616_v27 = vpack.c.bf16 %v825_v20, %v823_v19 }
  0xb0   : > { %1577 = vmatprep.subr.bf16.mxu0 %v1576_v47  ;;  %v822_v28 = vld [vmem:[#allocation9 + $0xa0] sm:$0xff]  ;;  %v824_v29 = vld [vmem:[#allocation9 + $0xb0] sm:$0xff]  ;;  %v1590_v30 = vpack.c.bf16 %v626_v23, %v624_v22  ;;  %v827_v31 = vld [vmem:[#allocation9 + $0xc8] sm:$0xff]  ;;  %v1592_v33 = vpack.c.bf16 %v631_v25, %v629_v24 }
  0xb1   : > { %1607 = vmatpush1.bf16.msra.mxu1 %v1606_v2  ;;  %v829_v32 = vld [vmem:[#allocation9 + $0xd8] sm:$0xff]  ;;  %v628_v34 = vld [vmem:[%s2641_s3 + $0xe0] sm:$0xff]  ;;  %v1618_v36 = vpack.c.bf16 %v824_v29, %v822_v28  ;;  %v826_v38 = vld [vmem:[#allocation9 + $0xc0] sm:$0xff] }
  0xb2   : > { %1609 = vmatprep.subr.bf16.mxu1 %v1608_v3  ;;  %v630_v35 = vld [vmem:[%s2641_s3 + $0xf0] sm:$0xff]  ;;  %v1620_v37 = vpack.c.bf16 %v829_v32, %v827_v31  ;;  %v828_v39 = vld [vmem:[#allocation9 + $0xd0] sm:$0xff]  ;;  %v831_v41 = vld [vmem:[#allocation9 + $0xe8] sm:$0xff] }
  0xb3   : > { %1579 = vmatpush1.bf16.msra.mxu0 %v1578_v57  ;;  %v1594_v40 = vpack.c.bf16 %v630_v35, %v628_v34  ;;  %v833_v42 = vld [vmem:[#allocation9 + $0xf8] sm:$0xff]  ;;  %v1622_v43 = vpack.c.bf16 %v828_v39, %v826_v38  ;;  %v830_v45 = vld [vmem:[#allocation9 + $0xe0] sm:$0xff]  ;;  %v832_v46 = vld [vmem:[#allocation9 + $0xf0] sm:$0xff] }
  0xb4   : > { %1581 = vmatprep.subr.bf16.mxu0 %v1580_v60  ;;  %v1624_v44 = vpack.c.bf16 %v833_v42, %v831_v41  ;;  %v597_v47 = vld [vmem:[%s519_s18] sm:$0xff]  ;;  %v835_v48 = vld [vmem:[#allocation9 + $0x108] sm:$0xff]  ;;  %v1626_v50 = vpack.c.bf16 %v832_v46, %v830_v45  ;;  %v834_v52 = vld [vmem:[#allocation9 + $0x100] sm:$0xff]  ;;  %s2713_s18 = sld [smem:[#allocation27_spill]] }
  0xb5   : > { %1611 = vmatpush1.bf16.msra.mxu1 %v1610_v14  ;;  %v837_v49 = vld [vmem:[#allocation9 + $0x118] sm:$0xff]  ;;  %v836_v53 = vld [vmem:[#allocation9 + $0x110] sm:$0xff]  ;;  %v839_v54 = vld [vmem:[#allocation9 + $0x128] sm:$0xff] }
  0xb6   : > { %1613 = vmatprep.subr.bf16.mxu1 %v1612_v15  ;;  %v1628_v51 = vpack.c.bf16 %v837_v49, %v835_v48  ;;  %v841_v55 = vld [vmem:[#allocation9 + $0x138] sm:$0xff]  ;;  %v1630_v56 = vpack.c.bf16 %v836_v53, %v834_v52  ;;  %v838_v58 = vld [vmem:[#allocation9 + $0x120] sm:$0xff]  ;;  %v840_v59 = vld [vmem:[#allocation9 + $0x130] sm:$0xff] }
  0xb7   : > { %1583 = vmatpush1.bf16.msra.mxu0 %v1582_v6  ;;  %v1632_v57 = vpack.c.bf16 %v841_v55, %v839_v54  ;;  %v843_v60 = vld [vmem:[#allocation9 + $0x148] sm:$0xff]  ;;  %v845_v61 = vld [vmem:[#allocation9 + $0x158] sm:$0xff]  ;;  %v1634_v62 = vpack.c.bf16 %v840_v59, %v838_v58  ;;  %v842_v0 = vld [vmem:[#allocation9 + $0x140] sm:$0xff] }
  0xb8   : > { %1585 = vmatprep.subr.bf16.mxu0 %v1584_v9  ;;  %v1636_v63 = vpack.c.bf16 %v845_v61, %v843_v60  ;;  %v844_v2 = vld [vmem:[#allocation9 + $0x150] sm:$0xff]  ;;  %v847_v3 = vld [vmem:[#allocation9 + $0x168] sm:$0xff]  ;;  %v849_v4 = vld [vmem:[#allocation9 + $0x178] sm:$0xff] }
  0xb9   : > { %1615 = vmatpush1.bf16.msra.mxu1 %v1614_v26  ;;  %v1638_v5 = vpack.c.bf16 %v844_v2, %v842_v0  ;;  %v1640_v6 = vpack.c.bf16 %v849_v4, %v847_v3  ;;  %v846_v7 = vld [vmem:[#allocation9 + $0x160] sm:$0xff]  ;;  %v848_v8 = vld [vmem:[#allocation9 + $0x170] sm:$0xff]  ;;  %v851_v9 = vld [vmem:[#allocation9 + $0x188] sm:$0xff] }
  0xba   : > { %1617 = vmatprep.subr.bf16.mxu1 %v1616_v27  ;;  %v853_v10 = vld [vmem:[#allocation9 + $0x198] sm:$0xff]  ;;  %v1642_v11 = vpack.c.bf16 %v848_v8, %v846_v7  ;;  %v850_v13 = vld [vmem:[#allocation9 + $0x180] sm:$0xff]  ;;  %v852_v14 = vld [vmem:[#allocation9 + $0x190] sm:$0xff] }
  0xbb   : > { %1587 = vmatpush1.bf16.msra.mxu0 %v1586_v18  ;;  %v1644_v12 = vpack.c.bf16 %v853_v10, %v851_v9  ;;  %v855_v15 = vld [vmem:[#allocation9 + $0x1a8] sm:$0xff]  ;;  %v857_v16 = vld [vmem:[#allocation9 + $0x1b8] sm:$0xff]  ;;  %v1646_v17 = vpack.c.bf16 %v852_v14, %v850_v13  ;;  %v854_v19 = vld [vmem:[#allocation9 + $0x1a0] sm:$0xff]  ;;  %v788_v13 = vlaneseq }
  0xbc   : > { %1589 = vmatprep.subr.bf16.mxu0 %v1588_v21  ;;  %v1648_v18 = vpack.c.bf16 %v857_v16, %v855_v15  ;;  %v856_v20 = vld [vmem:[#allocation9 + $0x1b0] sm:$0xff]  ;;  %v859_v21 = vld [vmem:[#allocation9 + $0x1c8] sm:$0xff]  ;;  %v861_v22 = vld [vmem:[#allocation9 + $0x1d8] sm:$0xff] }
  0xbd   : > { %1619 = vmatpush1.bf16.msra.mxu1 %v1618_v36  ;;  %v1650_v23 = vpack.c.bf16 %v856_v20, %v854_v19  ;;  %v1652_v24 = vpack.c.bf16 %v861_v22, %v859_v21  ;;  %v858_v25 = vld [vmem:[#allocation9 + $0x1c0] sm:$0xff]  ;;  %v860_v26 = vld [vmem:[#allocation9 + $0x1d0] sm:$0xff]  ;;  %v863_v28 = vld [vmem:[#allocation9 + $0x1e8] sm:$0xff]  ;;  %v789_v14 = vshrl.u32 %v788_v13, 7 }
  0xbe   : > { %1621 = vmatprep.subr.bf16.mxu1 %v1620_v37  ;;  %v1654_v27 = vpack.c.bf16 %v860_v26, %v858_v25  ;;  %v865_v29 = vld [vmem:[#allocation9 + $0x1f8] sm:$0xff]  ;;  %v862_v31 = vld [vmem:[#allocation9 + $0x1e0] sm:$0xff]  ;;  %v864_v32 = vld [vmem:[#allocation9 + $0x1f0] sm:$0xff] }
  0xbf   : > { %1591 = vmatpush1.bf16.msra.mxu0 %v1590_v30  ;;  %v1656_v30 = vpack.c.bf16 %v865_v29, %v863_v28  ;;  %v968_v34 = vld [vmem:[%s2708_s11 + $0x80] sm:$0xff]  ;;  %v969_v35 = vld [vmem:[%s2708_s11 + $0x88] sm:$0xff]  ;;  %v970_v39 = vld [vmem:[%s2708_s11 + $0x90] sm:$0xff]  ;;  %v2514_v15 = vsub.s32 0, %v789_v14 }
  0xc0   : > { %1593 = vmatprep.subr.bf16.mxu0 %v1592_v33  ;;  %v1658_v33 = vpack.c.bf16 %v864_v32, %v862_v31  ;;  %v952_v36 = vld [vmem:[%s2708_s11] sm:$0xff]  ;;  %v1660_v37 = vpack.c.bf16 %v969_v35, %v968_v34  ;;  %v953_v38 = vld [vmem:[%s2708_s11 + $0x8] sm:$0xff]  ;;  %v975_v52 = vld [vmem:[%s2708_s11 + $0xb8] sm:$0xff]  ;;  %v1984_v32 = vmov 0.0|0.0  }
  0xc1   : > { %1623 = vmatpush1.bf16.msra.mxu1 %v1622_v43  ;;  %v1662_v41 = vpack.c.bf16 %v953_v38, %v952_v36  ;;  %v954_v43 = vld [vmem:[%s2708_s11 + $0x10] sm:$0xff]  ;;  %v972_v45 = vld [vmem:[%s2708_s11 + $0xa0] sm:$0xff]  ;;  %v973_v46 = vld [vmem:[%s2708_s11 + $0xa8] sm:$0xff] }
  0xc2   : > { %1625 = vmatprep.subr.bf16.mxu1 %v1624_v44  ;;  %v955_v44 = vld [vmem:[%s2708_s11 + $0x18] sm:$0xff]  ;;  %v1668_v48 = vpack.c.bf16 %v973_v46, %v972_v45  ;;  %v956_v49 = vld [vmem:[%s2708_s11 + $0x20] sm:$0xff]  ;;  %v958_v55 = vld [vmem:[%s2708_s11 + $0x30] sm:$0xff] }
  0xc3   : > { %1595 = vmatpush1.bf16.msra.mxu0 %v1594_v40  ;;  %v971_v40 = vld [vmem:[%s2708_s11 + $0x98] sm:$0xff]  ;;  %v977_v58 = vld [vmem:[%s2708_s11 + $0xc8] sm:$0xff]  ;;  %v960_v61 = vld [vmem:[%s2708_s11 + $0x40] sm:$0xff] }
  0xc4   : > { %v1664_v42 = vpack.c.bf16 %v971_v40, %v970_v39  ;;  %1661 = vmatprep.subr.bf16.mxu0 %v1660_v37  ;;  %v979_v0 = vld [vmem:[%s2708_s11 + $0xd8] sm:$0xff]  ;;  %v962_v4 = vld [vmem:[%s2708_s11 + $0x50] sm:$0xff]  ;;  %v981_v7 = vld [vmem:[%s2708_s11 + $0xe8] sm:$0xff] }
  0xc5   : > { %1627 = vmatpush1.bf16.msra.mxu1 %v1626_v50  ;;  %v957_v50 = vld [vmem:[%s2708_s11 + $0x28] sm:$0xff]  ;;  %v964_v10 = vld [vmem:[%s2708_s11 + $0x60] sm:$0xff]  ;;  %v982_v26 = vld [vmem:[%s2708_s11 + $0xf0] sm:$0xff] }
  0xc6   : > { %780 = vmatmul.mubr.f32.vlgmr.msra.gmra.mrb[0].mxu0 %v597_v47  ;;  %1629 = vmatprep.subr.bf16.mxu1 %v1628_v51  ;;  %v1666_v47 = vpack.c.bf16 %v955_v44, %v954_v43  ;;  %v974_v51 = vld [vmem:[%s2708_s11 + $0xb0] sm:$0xff]  ;;  %v1670_v53 = vpack.c.bf16 %v957_v50, %v956_v49  ;;  %v786_v16 = vld [vmem:[%s2709_s10] sm:$0x3]  ;;  %v1138_v34 = vld [vmem:[%s2710_s27 + $0x8] sm:$0xff]  ;;  %s2712_s10 = sld [smem:[#allocation25_spill]] }
  0xc7   : > { %1663 = vmatpush3.bf16.msra.mxu0 %v1662_v41  ;;  %v1672_v54 = vpack.c.bf16 %v975_v52, %v974_v51  ;;  %v966_v29 = vld [vmem:[%s2708_s11 + $0x70] sm:$0xff]  ;;  %v866_v36 = vld [vmem:[%s2711_s8] sm:$0x3]  ;;  %v1140_v49 = vld [vmem:[%s2710_s27 + $0x18] sm:$0xff]  ;;  %s1905_s8 = sshll.u32 %s1987_s15, 4  ;;  %s1906_s8 = int_to_ptr.vmem [resolvable:$false] %s1905_s8 }
  0xc8   : > { %1665 = vmatprep.subr.bf16.mxu0 %v1664_v42  ;;  %v871_v38 = vrot.slane %v866_v36, %v2514_v15  ;;  %v1141_v51 = vld [vmem:[%s2710_s27 + $0x20] sm:$0xff]  ;;  %v1142_v52 = vld [vmem:[%s2710_s27 + $0x28] sm:$0xff]  ;;  %s1907_s24 = scalar_lea.vmem %s1906_s8, 32 }
  0xc9   : > { %1631 = vmatpush1.bf16.msra.mxu1 %v1630_v56  ;;  %v959_v56 = vld [vmem:[%s2708_s11 + $0x38] sm:$0xff] }
  0xca   : > { %1633 = vmatprep.subr.bf16.mxu1 %v1632_v57  ;;  %v976_v57 = vld [vmem:[%s2708_s11 + $0xc0] sm:$0xff]  ;;  %v1674_v59 = vpack.c.bf16 %v959_v56, %v958_v55 }
  0xcb   : > { %1667 = vmatpush3.bf16.msra.mxu0 %v1666_v47  ;;  %v1676_v60 = vpack.c.bf16 %v977_v58, %v976_v57  ;;  %v599_v47 = vld [vmem:[%s537_s16] sm:$0xff]  ;;  %s1329_s16 = sshll.u32 %s596_s29, 4  ;;  %s2596_s16 = int_to_ptr.vmem [resolvable:$true] %s1329_s16 }
  0xcc   : > { %1669 = vmatprep.subr.bf16.mxu0 %v1668_v48  ;;  %v949_v39 = vld [vmem:[%s2712_s10] sm:$0xff]  ;;  %v950_v40 = vld [vmem:[%s2712_s10 + $0x8] sm:$0xff]  ;;  %v951_v46 = vld [vmem:[%s2712_s10 + $0x10] sm:$0xff]  ;;  %s1901_s9 = scalar_lea.vmem %s2596_s16, 16  ;;  %p1908_p3 = scmp.lt.s32.totalorder %s2596_s16, %s1906_s8 }
  0xcd   : > { %1635 = vmatpush1.bf16.msra.mxu1 %v1634_v62  ;;  %v961_v62 = vld [vmem:[%s2708_s11 + $0x48] sm:$0xff]  ;;  %v1693_v44 = vpack.c.bf16 %v950_v40, %v949_v39  ;;  %v1139_v48 = vld [vmem:[%s2710_s27 + $0x10] sm:$0xff]  ;;  %p1902_p4 = scmp.ne.s32.totalorder %s2596_s16, %s1901_s9  ;;  %p1909_p5 = scmp.lt.s32.totalorder %s1907_s24, %s1901_s9 }
  0xce   : > { %1637 = vmatprep.subr.bf16.mxu1 %v1636_v63  ;;  %v978_v63 = vld [vmem:[%s2708_s11 + $0xd0] sm:$0xff]  ;;  %v1678_v2 = vpack.c.bf16 %v961_v62, %v960_v61  ;;  %v1699_v50 = vpack.c.bf16 %v1140_v49, %v1139_v48 }
  0xcf   : > { %1671 = vmatpush3.bf16.msra.mxu0 %v1670_v53  ;;  %v1680_v3 = vpack.c.bf16 %v979_v0, %v978_v63  ;;  %v1143_v53 = vld [vmem:[%s2710_s27 + $0x30] sm:$0xff]  ;;  %p1903_p12 = pnand %p1902_p4, %p2718_p9  ;;  %p1910_p7 = por %p1909_p5, %p1908_p3 }
  0xd0   : > { %1673 = vmatprep.subr.bf16.mxu0 %v1672_v54  ;;  %v1144_v54 = vld [vmem:[%s2710_s27 + $0x38] sm:$0xff] }
  0xd1   : > { %1639 = vmatpush1.bf16.msra.mxu1 %v1638_v5  ;;  %v963_v5 = vld [vmem:[%s2708_s11 + $0x58] sm:$0xff]  ;;  %v1705_v55 = vpack.c.bf16 %v1144_v54, %v1143_v53  ;;  %p1904_p6 = pneg %p1903_p12 }
  0xd2   : > { %1641 = vmatprep.subr.bf16.mxu1 %v1640_v6  ;;  %v980_v6 = vld [vmem:[%s2708_s11 + $0xe0] sm:$0xff]  ;;  %v1682_v8 = vpack.c.bf16 %v963_v5, %v962_v4 }
  0xd3   : > { %1675 = vmatpush3.bf16.msra.mxu0 %v1674_v59  ;;  %v1684_v9 = vpack.c.bf16 %v981_v7, %v980_v6  ;;  %v1466_v4 = vld [vmem:[%s2714_s26] ss:$0 sm:$0xff]  ;;  %p1911_p11 = pnand %p1910_p7, %p1904_p6 }
  0xd4   : > { %1677 = vmatprep.subr.bf16.mxu0 %v1676_v60  ;;  %v1465_v60 = vld [vmem:[%s2713_s18] ss:$0 sm:$0xff] }
  0xd5   : > { %1643 = vmatpush1.bf16.msra.mxu1 %v1642_v11  ;;  %v965_v11 = vld [vmem:[%s2708_s11 + $0x68] sm:$0xff] }
  0xd6   : > { %1645 = vmatprep.subr.bf16.mxu1 %v1644_v12  ;;  %v1686_v12 = vpack.c.bf16 %v965_v11, %v964_v10 }
  0xd7   : > { %1679 = vmatpush3.bf16.msra.mxu0 %v1678_v2  ;;  %v1228_v2 = vld [vmem:[#allocation2] sm:$0x1] }
  0xd8   : > { %1681 = vmatprep.subr.bf16.mxu0 %v1680_v3  ;;  %v1986_v3 = vmov 0  }
  0xd9   : > { %1647 = vmatpush1.bf16.msra.mxu1 %v1646_v17  ;;  %v794_v17 = vsub.s32 1, %v789_v14  ;;  %1782 = vset.pattern.permute.xlu0 %v1986_v3 }
  0xda   : > { %1649 = vmatprep.subr.bf16.mxu1 %v1648_v18  ;;  %v791_v18 = vrot.slane %v786_v16, %v2514_v15  ;;  %1231 = vperm.xlu0 %1782, %v1228_v2  }
  0xdb   : > { %1683 = vmatpush3.bf16.msra.mxu0 %v1682_v8  ;;  %v795_v19 = vrot.slane %v786_v16, %v794_v17  ;;  %v875_v37 = vrot.slane %v866_v36, %v794_v17 }
  0xdc   : > { %1685 = vmatprep.subr.bf16.mxu0 %v1684_v9  ;;  %v1227_v9 = vld [vmem:[%s2715_s20] sm:$0x1] }
  0xdd   : > { %1651 = vmatpush1.bf16.msra.mxu1 %v1650_v23 }
  0xde   : > { %1653 = vmatprep.subr.bf16.mxu1 %v1652_v24 }
  0xdf   : > { %1687 = vmatpush3.bf16.msra.mxu0 %v1686_v12 }
  0xe1   : > { %1655 = vmatpush1.bf16.msra.mxu1 %v1654_v27  ;;  %v983_v27 = vld [vmem:[%s2708_s11 + $0xf8] sm:$0xff] }
  0xe2   : > { %1657 = vmatprep.subr.bf16.mxu1 %v1656_v30  ;;  %v1688_v28 = vpack.c.bf16 %v983_v27, %v982_v26  ;;  %v967_v30 = vld [vmem:[%s2708_s11 + $0x78] sm:$0xff] }
  0xe3   : > { %v1690_v31 = vpack.c.bf16 %v967_v30, %v966_v29 }
  0xe4   : > { %1689 = vmatprep.subr.bf16.mxu0 %v1688_v28 }
  0xe5   : > { %1659 = vmatpush1.bf16.msra.mxu1 %v1658_v33  ;;  %1691 = vmatpush3.bf16.msra.mxu0 %v1690_v31  ;;  %v1137_v33 = vld [vmem:[%s2710_s27] sm:$0xff] }
  0xe6   : > { %1692 = vmatprep.subr.bf16.mxu0 %v1984_v32  ;;  %1695 = vmatprep.subr.bf16.mxu1 %v1984_v32  ;;  %v1696_v35 = vpack.c.bf16 %v1138_v34, %v1137_v33 }
 0x159   : > { %v1232_v10 = vpop.permute.xlu0 %1231 }
 0x15a   : > { %v1237_v11 = vrot.slane %v1232_v10, %v2514_v15 }
 0x199   : > { %v781_v20 = vpop.f32.mrb[0].mxu0 }
 0x19a   : > { %v798_v21 = vadd.f32 %v791_v18, %v781_v20  ;;  %v783_v22 = vpop.f32.mrb[1].mxu0 }
 0x19b   : > { %v799_v23 = vadd.f32 %v795_v19, %v783_v22 }
 0x19c   : > { %v800_v25 = vmax.f32 %v798_v21, 0.0 }
 0x19d   : > { %v801_v24 = vmax.f32 %v799_v23, 0.0 }
 0x19f   : > { %942 = vmatprep.mubr.f32.mxu1 %v801_v24 }
 0x1a0   : > { %943 = vmatmul.mubr.f32.vlgmr.msra.gmra.mrb[0].mxu1 %v800_v25 }
 0x1a1   : > { %1548 = vmatprep.mubr.msk.f32.mxu1 %vm1985_vm1, %v1983_v1  ;;  %1697 = vmatpush3.bf16.msra.mxu1 %v1696_v35 }
 0x1a2   : > { %1698 = vmatprep.subr.bf16.mxu1 %v1984_v32 }
 0x1a5   : > { %1700 = vmatpush3.bf16.msra.mxu1 %v1699_v50 }
 0x1a6   : > { %1701 = vmatprep.subr.bf16.mxu1 %v1984_v32 }
 0x273   : > { %v944_v41 = vpop.f32.mrb[0].mxu1 }
 0x274   : > { %v946_v42 = vpop.f32.mrb[1].mxu1  ;;  %v945_v45 = vadd.f32 %v944_v41, %v871_v38 }
 0x275   : > { %v947_v43 = vadd.f32 %v946_v42, %v875_v37 }
 0x277   : > { %1048 = vmatprep.mubr.f32.mxu0 %v947_v43 }
 0x278   : > { %1049 = vmatmul.mubr.f32.vlgmr.msra.gmra.mrb[2].mxu0 %v945_v45 }
 0x279   : > { %1694 = vmatpush3.bf16.msra.mxu0 %v1693_v44  ;;  %1529 = vmatprep.mubr.msk.f32.mxu0 %vm1985_vm1, %v1983_v1 }
 0x27a   : > { %1527 = vmatprep.subr.mxu0 %v1983_v1 }
 0x27d   : > { %1528 = vmatpush3.msra.mxu0 %v951_v46 }
 0x27e   : > { %1530 = vmatmul.mubr.msk.f32.vlgmr.msra.gmra.mrb[4].mxu0 %vm1054_vm2, %v599_v47  ;;  %1551 = vmatprep.subr.mxu0 %v1983_v1 }
 0x27f   : > { %1553 = vmatprep.mubr.msk.f32.mxu0 %vm1985_vm1, %v1983_v1  ;;  %v1702_v1 = vpack.c.bf16 %v1142_v52, %v1141_v51 }
 0x281   : > { %1703 = vmatpush3.bf16.msra.mxu1 %v1702_v1 }
 0x282   : > { %1704 = vmatprep.subr.bf16.mxu1 %v1984_v32 }
 0x285   : > { %1706 = vmatpush3.bf16.msra.mxu1 %v1705_v55 }
 0x34b   : > { %v1505_v56 = vpop.f32.mrb[2].mxu0 }
 0x34c   : > { %v1506_v57 = vpop.f32.mrb[3].mxu0 }
 0x34d   : > { %v1507_v58 = vadd.f32 %v1506_v57, %v1505_v56 }
 0x351   : > { %v1124_v59 = vpop.f32.mrb[4].mxu0 }
 0x352   : > { %v1125_v61 = vadd.f32 %v1507_v58, %v1124_v59  ;;  %v1531_v62 = vpop.f32.mrb[5].mxu0 }
 0x354   : > { %v1135_v63 = vadd.f32 %v1465_v60, %v1125_v61 }
 0x356   : > { %v1136_v0 = vmax.f32 %v1135_v63, 0.0 }
 0x358   : > { %1549 = vmatmul.mubr.msk.f32.vlgmr.msra.gmra.mrb[2].mxu1 %vm1152_vm3, %v1136_v0 }
 0x42b   : > { %v1222_v5 = vpop.f32.mrb[2].mxu1 }
 0x42c   : > { %v1223_v6 = vadd.f32 %v1466_v4, %v1222_v5  ;;  %v1550_v7 = vpop.f32.mrb[3].mxu1 }
 0x42e   : > { %v1226_v8 = vmax.f32 %v1223_v6, 0.0 }
 0x430   : > { %1552 = vmatpush3.xpose.msk.msra.mxu0 %vm1152_vm3, %v1226_v8 }
 0x433   : > { %1554 = vmatmul.mubr.msk.f32.vlgmr.msra.gmra.mrb[6].mxu0 %vm1152_vm3, %v1227_v9 }
 0x506   : > { %v1310_v12 = vpop.f32.mrb[6].mxu0 }
 0x507   : > { %v1311_v13 = vadd.f32 %v1310_v12, %v1237_v11  ;;  %v1555_v14 = vpop.f32.mrb[7].mxu0 }
 0x509   : > { %1315 = vst.msk [vmem:[%s596_s29] sm:$0x1] %vm1314_vm4, %v1311_v13 }
 0x50a   : > { %1914 = shalt.err (!%p1911_p11)
}
 0x50b   : > { %s1915_s14 = scalar_lea.hbm %s2594_s7, 16  ;;  %s1919_s13 = scalar_lea.hbm %s2717_s30, 32 }
 0x50c   : > { %p1916_p0 = scmp.ne.s32.totalorder %s2594_s7, %s1915_s14  ;;  %p1920_p8 = scmp.lt.u32.totalorder %s2594_s7, %s2717_s30 }
 0x50d   : > { %p1921_p1 = scmp.lt.u32.totalorder %s1919_s13, %s1915_s14  ;;  %p1923_p4 = scmp.lt.u32.totalorder %s1915_s14, %s2594_s7 }
 0x50e   : > { %p1917_p13 = pnand %p1916_p0, %p2718_p9 }
 0x50f   : > { %p1922_p2 = por %p1921_p1, %p1920_p8 }
 0x510   : > { %p1918_p10 = pneg %p1917_p13 }
 0x511   : > { %p1924_p12 = por %p1923_p4, %p1922_p2 }
 0x513   : > { %p1925_p6 = pnand %p1924_p12, %p1918_p10 }
 0x515   : > { %1928 = shalt.err (!%p1925_p6)
}
 0x516   : > { %1719 = dma.vmem_to_hbm [thread:$0]  (%p2718_p9), %s2596_s16, 16, %s2594_s7, %s1317_s5  }
 0x517 PF: > { %s2719_s1 = sld [smem:[#allocation16_spill]]  ;;  %s2720_s20 = sld [smem:[#allocation21_spill]] }
 0x518   : > { %s2721_s17 = sld [smem:[#allocation17_spill]] }
 0x51d   : > { %s1341_s29 = sand.u32 1, %s2719_s1   ;;  %p2722_p3 = scmp.ne.s32.totalorder %s2720_s20, 0 }
 0x51e   : > { %p2723_p5 = scmp.ge.s32.totalorder %s2721_s17, 2  ;;  %s1342_s25 = scalar_lea.sflag [#allocation5], %s1341_s29 }
 0x520   : > { %p1736_p7 = pnand %p2723_p5, %p2722_p3 }
 0x522   : > { %1958 = dma.done.wait (!%p1736_p7), %s1342_s25, 16  }
 0x523   : > { %1960 = vsyncadd (!%p1736_p7), %s1342_s25, 4294967280  ;;  %s2724_s23 = sld [smem:[#allocation18_spill]]  ;;  %s2725_s12 = sld [smem:[#allocation19_spill]] }
 0x524   : > { %s2726_s20 = smov %s1967_s21  ;;  %s2727_s21 = smov %s1971_s22 }
 0x529   : > { %p34_p11 = scmp.ge.s32.totalorder %s2724_s23, 4   ;;  %s2728_s22 = smov %s2725_s12 }
 0x52b   :  { %36 = sbr.rel (!%p34_p11) target bundleno = 19 (0x13), region = 153 }
 0x532   :  { %1346 = vsyncpa [#allocation4], 1 }
 0x533   :  { %1348 = vsyncpa [#allocation4 + $0x1], 1 }
 0x534   :  { %1349 = vsyncpa [#allocation7], 1 }
 0x535   :  { %1351 = vsyncpa [#allocation7 + $0x1], 1 }
 0x536   :  { %1352 = vsyncpa [#allocation10], 1 }
 0x537   :  { %1353 = vsyncpa [#allocation5], 1 }
 0x538   :  { %1355 = vsyncpa [#allocation5 + $0x1], 1 }

</bundles_post_ra>
